<compile_context>
chip_gen: v7x
topology: tpu7x:2x2x1
jax: 0.10.0
libtpu: 0.0.40
codegen_flags: <defaults>
</compile_context>

<pallas_src>
import jax
import jax.numpy as jnp
from jax.experimental import pallas as pl
from jax.experimental.pallas import tpu as pltpu

_SQRT_2_OVER_PI = 0.7978845608028654


def _round_up(a, b):
    return (a + b - 1) // b * b


def _gelu_tanh(h):
    # Matches nn.GELU(approximate='tanh') / jax.nn.gelu(approximate=True).
    return 0.5 * h * (1.0 + jnp.tanh(_SQRT_2_OVER_PI * (h + 0.044715 * h * h * h)))


def _mlp_resident_kernel(x_ref, wfc_ref, bfc_ref, wproj_ref, bproj_ref, o_ref):
    x = x_ref[...]
    if x.dtype != wfc_ref.dtype:
        x = x.astype(wfc_ref.dtype)
    # c_fc: [tm, E] @ [E, H] -> f32 accumulator
    h = jnp.dot(x, wfc_ref[...], preferred_element_type=jnp.float32)
    h = _gelu_tanh(h + bfc_ref[...].astype(jnp.float32))
    # c_proj: narrow operands, f32 accumulator
    o = jnp.dot(h.astype(wproj_ref.dtype), wproj_ref[...],
                preferred_element_type=jnp.float32)
    o = o + bproj_ref[...].astype(jnp.float32)
    o_ref[...] = o.astype(o_ref.dtype)


def _mlp_stream_kernel(x_ref, wfc_ref, bfc_ref, wproj_ref, bproj_ref, o_ref, acc_ref):
    j = pl.program_id(1)

    @pl.when(j == 0)
    def _():
        acc_ref[...] = jnp.zeros_like(acc_ref)

    x = x_ref[...]
    if x.dtype != wfc_ref.dtype:
        x = x.astype(wfc_ref.dtype)
    # Partial hidden chunk: [tm, E] @ [E, th]
    h = jnp.dot(x, wfc_ref[...], preferred_element_type=jnp.float32)
    h = _gelu_tanh(h + bfc_ref[...].astype(jnp.float32))
    # Accumulate projection contribution of this chunk: [tm, th] @ [th, E]
    acc_ref[...] += jnp.dot(h.astype(wproj_ref.dtype), wproj_ref[...],
                            preferred_element_type=jnp.float32)

    @pl.when(j == pl.num_programs(1) - 1)
    def _():
        o_ref[...] = (acc_ref[...] + bproj_ref[...].astype(jnp.float32)
                      ).astype(o_ref.dtype)


def _pick_hidden_tile(H, th):
    """Largest multiple of 128 <= th that divides H (else the full H)."""
    if th >= H:
        return H
    d = (th // 128) * 128
    while d >= 128:
        if H % d == 0:
            return d
        d -= 128
    return H


def mlp_pallas(x, w_fc, b_fc, w_proj, b_proj, *,
               tm=256, th=512,
               compute_dtype=jnp.bfloat16,
               resident_weight_budget=40 * 1024 * 1024,
               force_stream=False):
    """GPT-2 MLP: x[B,T,E] -> [B,T,E].  W_fc: [E,4E], W_proj: [4E,E]."""
    B, T, E = x.shape
    H = w_fc.shape[1]
    M = B * T
    out_dtype = x.dtype

    # One-time dtype conversion of the weights (outside the kernel).
    w_fc_c = w_fc.astype(compute_dtype)
    w_proj_c = w_proj.astype(compute_dtype)
    b_fc2 = b_fc.reshape(1, H).astype(jnp.float32)
    b_proj2 = b_proj.reshape(1, E).astype(jnp.float32)

    # Row tile: big, but no bigger than the sublane-padded row count; pad M so
    # it divides evenly (masked/padded tail instead of asserting).
    tm_eff = _round_up(min(tm, _round_up(M, 8)), 8)
    M_pad = _round_up(M, tm_eff)

    x2 = x.reshape(M, E)
    if M_pad != M:
        x2 = jnp.pad(x2, ((0, M_pad - M), (0, 0)))

    c_item = jnp.dtype(compute_dtype).itemsize
    in_item = jnp.dtype(x2.dtype).itemsize
    out_item = jnp.dtype(out_dtype).itemsize
    resident_bytes = 2 * E * H * c_item
    use_stream = force_stream or (resident_bytes > resident_weight_budget)

    n_row_tiles = M_pad // tm_eff
    flops = 4 * M_pad * E * H            # two matmuls, 2*M*E*H each
    transcendentals = M_pad * H          # tanh in GELU

    if not use_stream:
        grid = (n_row_tiles,)
        in_specs = [
            pl.BlockSpec((tm_eff, E), lambda i: (i, 0)),   # x tile
            pl.BlockSpec((E, H), lambda i: (0, 0)),        # W_fc (resident)
            pl.BlockSpec((1, H), lambda i: (0, 0)),        # b_fc (resident)
            pl.BlockSpec((H, E), lambda i: (0, 0)),        # W_proj (resident)
            pl.BlockSpec((1, E), lambda i: (0, 0)),        # b_proj (resident)
        ]
        out_specs = pl.BlockSpec((tm_eff, E), lambda i: (i, 0))
        scratch_shapes = []
        kernel = _mlp_resident_kernel
        dim_sem = ("parallel",)
        w_stream_factor = 1
        tmp_bytes = tm_eff * H * (4 + c_item)
        w_vmem = resident_bytes + (H + E) * 4
        acc_bytes = 0
    else:
        th_eff = _pick_hidden_tile(H, th)
        grid = (n_row_tiles, H // th_eff)
        in_specs = [
            pl.BlockSpec((tm_eff, E), lambda i, j: (i, 0)),   # x tile
            pl.BlockSpec((E, th_eff), lambda i, j: (0, j)),   # W_fc column tile
            pl.BlockSpec((1, th_eff), lambda i, j: (0, j)),   # b_fc chunk
            pl.BlockSpec((th_eff, E), lambda i, j: (j, 0)),   # W_proj row tile
            pl.BlockSpec((1, E), lambda i, j: (0, 0)),        # b_proj
        ]
        out_specs = pl.BlockSpec((tm_eff, E), lambda i, j: (i, 0))
        scratch_shapes = [pltpu.VMEM((tm_eff, E), jnp.float32)]
        kernel = _mlp_stream_kernel
        dim_sem = ("parallel", "arbitrary")
        w_stream_factor = n_row_tiles
        tmp_bytes = tm_eff * th_eff * (4 + c_item)
        w_vmem = 2 * (2 * E * th_eff * c_item) + 2 * (th_eff + E) * 4
        acc_bytes = tm_eff * E * 4

    io_vmem = 2 * tm_eff * E * (in_item + out_item)   # double-buffered x / out
    needed = w_vmem + io_vmem + tmp_bytes + acc_bytes
    vmem_limit = int(min(max(needed + (8 << 20), 32 << 20), 64 << 20))

    bytes_accessed = int(
        M_pad * E * (in_item + out_item)
        + 2 * E * H * c_item * w_stream_factor
        + (H + E) * 4)

    out2 = pl.pallas_call(
        kernel,
        out_shape=jax.ShapeDtypeStruct((M_pad, E), out_dtype),
        grid_spec=pltpu.PrefetchScalarGridSpec(
            num_scalar_prefetch=0,
            grid=grid,
            in_specs=in_specs,
            out_specs=out_specs,
            scratch_shapes=scratch_shapes,
        ),
        compiler_params=pltpu.CompilerParams(
            dimension_semantics=dim_sem,
            vmem_limit_bytes=vmem_limit,
        ),
        cost_estimate=pl.CostEstimate(
            flops=int(flops),
            transcendentals=int(transcendentals),
            bytes_accessed=bytes_accessed,
        ),
    )(x2, w_fc_c, b_fc2, w_proj_c, b_proj2)

    return out2[:M].reshape(B, T, E)


def mlp_reference(x, w_fc, b_fc, w_proj, b_proj):
    h = jnp.dot(x, w_fc) + b_fc
    h = jax.nn.gelu(h, approximate=True)
    return jnp.dot(h, w_proj) + b_proj


if __name__ == "__main__":
    # Small but lane-dense shapes consistent with the module: batch=2, seq=8,
    # n_embd=128 (so the last dim maps to full 128-lane vregs).
    B, T, E = 2, 8, 128
    H = 4 * E

    key = jax.random.PRNGKey(0)
    kx, kwf, kbf, kwp, kbp = jax.random.split(key, 5)

    x = jax.random.normal(kx, (B, T, E), dtype=jnp.float32)
    w_fc = jax.random.normal(kwf, (E, H), dtype=jnp.float32) * (1.0 / E) ** 0.5
    b_fc = jax.random.normal(kbf, (H,), dtype=jnp.float32) * 0.01
    w_proj = jax.random.normal(kwp, (H, E), dtype=jnp.float32) * (1.0 / H) ** 0.5
    b_proj = jax.random.normal(kbp, (E,), dtype=jnp.float32) * 0.01

    ref = mlp_reference(x, w_fc, b_fc, w_proj, b_proj)

    # 1) f32 compute path (exact vs reference), weights resident.
    out_f32 = jax.block_until_ready(
        mlp_pallas(x, w_fc, b_fc, w_proj, b_proj, compute_dtype=jnp.float32))
    assert out_f32.shape == (B, T, E)
    assert jnp.allclose(out_f32, ref, atol=1e-4, rtol=1e-4), "f32 resident mismatch"

    # 2) Default bf16 compute path (native MXU dtype), weights resident.
    out_bf16 = jax.block_until_ready(
        mlp_pallas(x, w_fc, b_fc, w_proj, b_proj))
    assert jnp.allclose(out_bf16, ref, atol=3e-2, rtol=3e-2), "bf16 resident mismatch"

    # 3) Hidden-dim streaming path (f32 accumulator scratch), forced on.
    out_stream = jax.block_until_ready(
        mlp_pallas(x, w_fc, b_fc, w_proj, b_proj,
                   compute_dtype=jnp.float32, force_stream=True, th=256))
    assert jnp.allclose(out_stream, ref, atol=1e-4, rtol=1e-4), "stream mismatch"

    # 4) Odd row count exercises the padded-tail handling (M = 15).
    x_odd = jax.random.normal(kx, (3, 5, E), dtype=jnp.float32)
    ref_odd = mlp_reference(x_odd, w_fc, b_fc, w_proj, b_proj)
    out_odd = jax.block_until_ready(
        mlp_pallas(x_odd, w_fc, b_fc, w_proj, b_proj))
    assert out_odd.shape == (3, 5, E)
    assert jnp.allclose(out_odd, ref_odd, atol=3e-2, rtol=3e-2), "padded mismatch"

    print("KERNEL_OK")
</pallas_src>

<mosaic_0001>
module attributes {stable_mosaic.version = 11 : i64} {
  func.func @_mlp_resident_kernel(%arg0: i32, %arg1: memref<16x128xf32, #tpu.memory_space<vmem>>, %arg2: memref<128x512xf32, #tpu.memory_space<vmem>>, %arg3: memref<1x512xf32, #tpu.memory_space<vmem>>, %arg4: memref<512x128xf32, #tpu.memory_space<vmem>>, %arg5: memref<1x128xf32, #tpu.memory_space<vmem>>, %arg6: memref<16x128xf32, #tpu.memory_space<vmem>>) attributes {dimension_semantics = [#tpu.dimension_semantics<parallel>], iteration_bounds = array<i64: 1>, scalar_prefetch = 0 : i64, scratch_operands = 0 : i64, tpu.core_type = #tpu.core_type<tc>, window_params = [{transform_indices = @transform_0, window_bounds = array<i64: 16, 128>}, {pipeline_mode = #tpu.pipeline_mode<synchronous>, transform_indices = @transform_1, window_bounds = array<i64: 128, 512>}, {pipeline_mode = #tpu.pipeline_mode<synchronous>, transform_indices = @transform_2, window_bounds = array<i64: 1, 512>}, {pipeline_mode = #tpu.pipeline_mode<synchronous>, transform_indices = @transform_3, window_bounds = array<i64: 512, 128>}, {pipeline_mode = #tpu.pipeline_mode<synchronous>, transform_indices = @transform_4, window_bounds = array<i64: 1, 128>}, {transform_indices = @transform_5, window_bounds = array<i64: 16, 128>}]} {
    %c0 = arith.constant 0 : index
    %c0_0 = arith.constant 0 : index
    %0 = vector.load %arg1[%c0, %c0_0] : memref<16x128xf32, #tpu.memory_space<vmem>>, vector<16x128xf32>
    %c0_1 = arith.constant 0 : index
    %c0_2 = arith.constant 0 : index
    %1 = vector.load %arg2[%c0_1, %c0_2] : memref<128x512xf32, #tpu.memory_space<vmem>>, vector<128x512xf32>
    %cst = arith.constant dense<0.000000e+00> : vector<16x512xf32>
    %2 = tpu.matmul %0, %1, %cst {dimension_numbers = #tpu.dot_dimension_numbers<[1], [0], [0], [1], [0, 0, 1, 1], [], []>} : vector<16x128xf32>, vector<128x512xf32>, vector<16x512xf32> -> vector<16x512xf32>
    %c0_3 = arith.constant 0 : index
    %c0_4 = arith.constant 0 : index
    %3 = vector.load %arg3[%c0_3, %c0_4] : memref<1x512xf32, #tpu.memory_space<vmem>>, vector<1x512xf32>
    %4 = vector.broadcast %3 : vector<1x512xf32> to vector<16x512xf32>
    %5 = arith.addf %2, %4 : vector<16x512xf32>
    %cst_5 = arith.constant 5.000000e-01 : f32
    %6 = vector.broadcast %cst_5 : f32 to vector<16x512xf32>
    %7 = arith.mulf %6, %5 : vector<16x512xf32>
    %cst_6 = arith.constant 4.471500e-02 : f32
    %8 = vector.broadcast %cst_6 : f32 to vector<16x512xf32>
    %9 = arith.mulf %8, %5 : vector<16x512xf32>
    %10 = arith.mulf %9, %5 : vector<16x512xf32>
    %11 = arith.mulf %10, %5 : vector<16x512xf32>
    %12 = arith.addf %5, %11 : vector<16x512xf32>
    %cst_7 = arith.constant 0.797884583 : f32
    %13 = vector.broadcast %cst_7 : f32 to vector<16x512xf32>
    %14 = arith.mulf %13, %12 : vector<16x512xf32>
    %15 = math.tanh %14 : vector<16x512xf32>
    %cst_8 = arith.constant 1.000000e+00 : f32
    %16 = vector.broadcast %cst_8 : f32 to vector<16x512xf32>
    %17 = arith.addf %16, %15 : vector<16x512xf32>
    %18 = arith.mulf %7, %17 : vector<16x512xf32>
    %c0_9 = arith.constant 0 : index
    %c0_10 = arith.constant 0 : index
    %19 = vector.load %arg4[%c0_9, %c0_10] : memref<512x128xf32, #tpu.memory_space<vmem>>, vector<512x128xf32>
    %cst_11 = arith.constant dense<0.000000e+00> : vector<16x128xf32>
    %20 = tpu.matmul %18, %19, %cst_11 {dimension_numbers = #tpu.dot_dimension_numbers<[1], [0], [0], [1], [0, 0, 1, 1], [], []>} : vector<16x512xf32>, vector<512x128xf32>, vector<16x128xf32> -> vector<16x128xf32>
    %c0_12 = arith.constant 0 : index
    %c0_13 = arith.constant 0 : index
    %21 = vector.load %arg5[%c0_12, %c0_13] : memref<1x128xf32, #tpu.memory_space<vmem>>, vector<1x128xf32>
    %22 = vector.broadcast %21 : vector<1x128xf32> to vector<16x128xf32>
    %23 = arith.addf %20, %22 : vector<16x128xf32>
    %c0_14 = arith.constant 0 : index
    %c0_15 = arith.constant 0 : index
    %24 = vector.load %arg6[%c0_14, %c0_15] : memref<16x128xf32, #tpu.memory_space<vmem>>, vector<16x128xf32>
    tpu.vector_store %arg6[%c0_14, %c0_15], %23 {strides = array<i32>} : memref<16x128xf32, #tpu.memory_space<vmem>>, vector<16x128xf32>,
    return
  }
  func.func @transform_0(%arg0: i32) -> (i32, i32) {
    %c0_i32 = arith.constant 0 : i32
    %c0_i32_0 = arith.constant 0 : i32
    return %arg0, %c0_i32 : i32, i32
  }
  func.func @transform_1(%arg0: i32) -> (i32, i32) {
    %c0_i32 = arith.constant 0 : i32
    %c0_i32_0 = arith.constant 0 : i32
    %c0_i32_1 = arith.constant 0 : i32
    return %c0_i32, %c0_i32_0 : i32, i32
  }
  func.func @transform_2(%arg0: i32) -> (i32, i32) {
    %c0_i32 = arith.constant 0 : i32
    %c0_i32_0 = arith.constant 0 : i32
    %c0_i32_1 = arith.constant 0 : i32
    return %c0_i32, %c0_i32_0 : i32, i32
  }
  func.func @transform_3(%arg0: i32) -> (i32, i32) {
    %c0_i32 = arith.constant 0 : i32
    %c0_i32_0 = arith.constant 0 : i32
    %c0_i32_1 = arith.constant 0 : i32
    return %c0_i32, %c0_i32_0 : i32, i32
  }
  func.func @transform_4(%arg0: i32) -> (i32, i32) {
    %c0_i32 = arith.constant 0 : i32
    %c0_i32_0 = arith.constant 0 : i32
    %c0_i32_1 = arith.constant 0 : i32
    return %c0_i32, %c0_i32_0 : i32, i32
  }
  func.func @transform_5(%arg0: i32) -> (i32, i32) {
    %c0_i32 = arith.constant 0 : i32
    %c0_i32_0 = arith.constant 0 : i32
    return %arg0, %c0_i32 : i32, i32
  }
}

</mosaic_0001>

<bundles_post_ra>
// kernel: tpu_custom_call.1
= control target key start
LH: loop header
LB: loop body
LE: loop exit
PB: predicated region body
PF: predicated region fallthrough
CT: control target
= control target key end

     0   :  { %10 = vsyncpa [#allocation3], 0  ;;  %s1082_s0 = inlined_call_operand.hbm [shape: f32[16,128], index: 0, kind: input, shape index: {}]   ;;  %s1083_s1 = inlined_call_operand.hbm [shape: f32[128,512], index: 1, kind: input, shape index: {}]   ;;  %s1084_s2 = inlined_call_operand.vmem [shape: f32[1,512], index: 2, kind: input, shape index: {}]   ;;  %s1085_s3 = inlined_call_operand.hbm [shape: f32[512,128], index: 3, kind: input, shape index: {}]   ;;  %s1086_s4 = inlined_call_operand.vmem [shape: f32[1,128], index: 4, kind: input, shape index: {}]   ;;  %s1087_s5 = inlined_call_operand.hbm [shape: f32[16,128], index: 5, kind: output, shape index: {}]  }
   0x1   :  { %11 = vsyncpa [#allocation6], 0 }
   0x2   :  { %12 = vsyncpa [#allocation4], 0  ;;  %s941_s18 = smov [#allocation5]   ;;  %s847_s22 = scalar_lea.hbm %s1083_s1, 8192 }
   0x3   :  { %s30_s19 = sshll.u32 %s941_s18, 4  ;;  %p848_p0 = scmp.ne.s32.totalorder %s1083_s1, %s847_s22  ;;  %s31_s19 = int_to_ptr.vmem [resolvable:$true] %s30_s19 }
   0x4   :  { %p851_p1 = scmp.lt.u32.totalorder %s847_s22, %s1083_s1 }
   0x6   :  { %p853_p2 = pnand %p851_p1, %p848_p0 }
   0x8   :  { %856 = shalt.err (!%p853_p2)
}
   0x9   :  { %s857_s27 = scalar_lea.vmem %s31_s19, 8192  ;;  %p862_p4 = scmp.lt.s32.totalorder %s31_s19, %s31_s19 }
   0xa   :  { %p858_p3 = scmp.ne.s32.totalorder %s31_s19, %s857_s27  ;;  %p863_p5 = scmp.lt.s32.totalorder %s857_s27, %s857_s27 }
   0xc   :  { %p864_p6 = por %p863_p5, %p862_p4 }
   0xe   :  { %p865_p7 = pnand %p864_p6, %p858_p3 }
  0x10   :  { %868 = shalt.err (!%p865_p7)
}
  0x11   :  { %s942_s28 = smov 512   ;;  %s943_s29 = smov 32  }
  0x12   :  { %36 = dma.hbm_to_vmem [thread:$0]  %s1083_s1, 8192, %s31_s19, [#allocation6], %s942_s28, %s942_s28, %s943_s29  }
  0x13   :  { %s944_s7 = smov [#allocation2]   ;;  %s869_s11 = scalar_lea.hbm %s1082_s0, 256 }
  0x14   :  { %s18_s8 = sshll.u32 %s944_s7, 4  ;;  %p870_p8 = scmp.ne.s32.totalorder %s1082_s0, %s869_s11  ;;  %s19_s8 = int_to_ptr.vmem [resolvable:$true] %s18_s8 }
  0x15   :  { %p873_p9 = scmp.lt.u32.totalorder %s869_s11, %s1082_s0 }
  0x17   :  { %p875_p10 = pnand %p873_p9, %p870_p8 }
  0x19   :  { %878 = shalt.err (!%p875_p10)
}
  0x1a   :  { %s879_s16 = scalar_lea.vmem %s19_s8, 256  ;;  %p884_p12 = scmp.lt.s32.totalorder %s19_s8, %s19_s8 }
  0x1b   :  { %p880_p11 = scmp.ne.s32.totalorder %s19_s8, %s879_s16  ;;  %p885_p13 = scmp.lt.s32.totalorder %s879_s16, %s879_s16 }
  0x1d   :  { %p886_p0 = por %p885_p13, %p884_p12 }
  0x1f   :  { %p887_p1 = pnand %p886_p0, %p880_p11 }
  0x21   :  { %890 = shalt.err (!%p887_p1)
}
  0x22   :  { %s945_s1 = smov 128   ;;  %s946_s17 = smov 8  }
  0x23   :  { %24 = dma.hbm_to_vmem [thread:$0]  %s1082_s0, 256, %s19_s8, [#allocation3], %s945_s1, %s945_s1, %s946_s17  }
  0x24   :  { %s947_s20 = smov [#allocation7]   ;;  %s891_s24 = scalar_lea.hbm %s1085_s3, 8192 }
  0x25   :  { %s44_s21 = sshll.u32 %s947_s20, 4  ;;  %p892_p2 = scmp.ne.s32.totalorder %s1085_s3, %s891_s24  ;;  %s45_s21 = int_to_ptr.vmem [resolvable:$true] %s44_s21 }
  0x26   :  { %p895_p3 = scmp.lt.u32.totalorder %s891_s24, %s1085_s3 }
  0x28   :  { %p897_p4 = pnand %p895_p3, %p892_p2 }
  0x2a   :  { %900 = shalt.err (!%p897_p4)
}
  0x2b   :  { %s901_s29 = scalar_lea.vmem %s45_s21, 8192  ;;  %p906_p6 = scmp.lt.s32.totalorder %s45_s21, %s45_s21 }
  0x2c   :  { %p902_p5 = scmp.ne.s32.totalorder %s45_s21, %s901_s29  ;;  %p907_p7 = scmp.lt.s32.totalorder %s901_s29, %s901_s29 }
  0x2e   :  { %p908_p8 = por %p907_p7, %p906_p6 }
  0x30   :  { %p909_p9 = pnand %p908_p8, %p902_p5 }
  0x32   :  { %912 = shalt.err (!%p909_p9)
}
  0x33   :  { %50 = dma.hbm_to_vmem [thread:$0]  %s1085_s3, 8192, %s45_s21, [#allocation6], %s945_s1, %s945_s1, %s946_s17  }
  0x34   :  { %935 = dma.done.wait [#allocation3], 256  }
  0x35   :  { %936 = vsyncadd [#allocation3], 4294967040 }
  0x36   :  { %937 = dma.done.wait [#allocation6], 16384  }
  0x37   :  { %938 = vsyncadd [#allocation6], 4294950912  ;;  %v948_v0 = vmov 0.0   ;;  %v65_v1 = vld [vmem:[#allocation5 + $0x8] sm:$0xff]  ;;  %v67_v3 = vld [vmem:[#allocation5 + $0x18] sm:$0xff]  ;;  %s949_s8 = smov [#allocation8]  }
  0x38   :  { %214 = vmatprep.mubr.f32.mxu0 %v948_v0  ;;  %291 = vmatprep.mubr.f32.mxu1 %v948_v0  ;;  %v69_v2 = vld [vmem:[#allocation5 + $0x28] sm:$0xff]  ;;  %v71_v5 = vld [vmem:[#allocation5 + $0x38] sm:$0xff]  ;;  %v64_v6 = vld [vmem:[#allocation5] sm:$0xff]  ;;  %s604_s9 = sshll.u32 %s949_s8, 4  ;;  %s605_s9 = int_to_ptr.vmem [resolvable:$true] %s604_s9 }
  0x39   :  { %v694_v4 = vpack.c.bf16 %v69_v2, %v65_v1  ;;  %v68_v7 = vld [vmem:[#allocation5 + $0x20] sm:$0xff]  ;;  %v726_v8 = vpack.c.bf16 %v71_v5, %v67_v3  ;;  %v66_v10 = vld [vmem:[#allocation5 + $0x10] sm:$0xff]  ;;  %v73_v12 = vld [vmem:[#allocation5 + $0x48] sm:$0xff]  ;;  %p918_p11 = scmp.lt.s32.totalorder %s605_s9, %s605_s9 }
  0x3a   :  { %v696_v9 = vpack.c.bf16 %v68_v7, %v64_v6  ;;  %v70_v11 = vld [vmem:[#allocation5 + $0x30] sm:$0xff]  ;;  %v77_v14 = vld [vmem:[#allocation5 + $0x68] sm:$0xff]  ;;  %v75_v15 = vld [vmem:[#allocation5 + $0x58] sm:$0xff] }
  0x3b   :  { %695 = vmatprep.subr.bf16.mxu0 %v694_v4  ;;  %v728_v13 = vpack.c.bf16 %v70_v11, %v66_v10  ;;  %v79_v16 = vld [vmem:[#allocation5 + $0x78] sm:$0xff]  ;;  %727 = vmatprep.subr.bf16.mxu1 %v726_v8  ;;  %v698_v17 = vpack.c.bf16 %v77_v14, %v73_v12  ;;  %v72_v19 = vld [vmem:[#allocation5 + $0x40] sm:$0xff]  ;;  %v74_v21 = vld [vmem:[#allocation5 + $0x50] sm:$0xff] }
  0x3c   :  { %697 = vmatpush1.bf16.msra.mxu0 %v696_v9  ;;  %v730_v18 = vpack.c.bf16 %v79_v16, %v75_v15  ;;  %v76_v20 = vld [vmem:[#allocation5 + $0x60] sm:$0xff]  ;;  %v78_v23 = vld [vmem:[#allocation5 + $0x70] sm:$0xff]  ;;  %v81_v24 = vld [vmem:[#allocation5 + $0x88] sm:$0xff] }
  0x3d   :  { %729 = vmatpush1.bf16.msra.mxu1 %v728_v13  ;;  %v700_v22 = vpack.c.bf16 %v76_v20, %v72_v19  ;;  %v85_v25 = vld [vmem:[#allocation5 + $0xa8] sm:$0xff]  ;;  %699 = vmatprep.subr.bf16.mxu0 %v698_v17  ;;  %v732_v26 = vpack.c.bf16 %v78_v23, %v74_v21  ;;  %v83_v28 = vld [vmem:[#allocation5 + $0x98] sm:$0xff]  ;;  %v80_v30 = vld [vmem:[#allocation5 + $0x80] sm:$0xff] }
  0x3e   :  { %731 = vmatprep.subr.bf16.mxu1 %v730_v18  ;;  %v702_v27 = vpack.c.bf16 %v85_v25, %v81_v24  ;;  %v87_v29 = vld [vmem:[#allocation5 + $0xb8] sm:$0xff]  ;;  %v84_v32 = vld [vmem:[#allocation5 + $0xa0] sm:$0xff]  ;;  %v82_v33 = vld [vmem:[#allocation5 + $0x90] sm:$0xff] }
  0x3f   :  { %v734_v31 = vpack.c.bf16 %v87_v29, %v83_v28  ;;  %v86_v34 = vld [vmem:[#allocation5 + $0xb0] sm:$0xff]  ;;  %v704_v35 = vpack.c.bf16 %v84_v32, %v80_v30  ;;  %v89_v36 = vld [vmem:[#allocation5 + $0xc8] sm:$0xff]  ;;  %v91_v38 = vld [vmem:[#allocation5 + $0xd8] sm:$0xff] }
  0x40   :  { %701 = vmatpush1.bf16.msra.mxu0 %v700_v22  ;;  %v93_v37 = vld [vmem:[#allocation5 + $0xe8] sm:$0xff]  ;;  %v736_v39 = vpack.c.bf16 %v86_v34, %v82_v33  ;;  %v95_v41 = vld [vmem:[#allocation5 + $0xf8] sm:$0xff]  ;;  %v88_v42 = vld [vmem:[#allocation5 + $0xc0] sm:$0xff] }
  0x41   :  { %733 = vmatpush1.bf16.msra.mxu1 %v732_v26  ;;  %703 = vmatprep.subr.bf16.mxu0 %v702_v27  ;;  %v706_v40 = vpack.c.bf16 %v93_v37, %v89_v36  ;;  %v92_v43 = vld [vmem:[#allocation5 + $0xe0] sm:$0xff]  ;;  %v738_v44 = vpack.c.bf16 %v95_v41, %v91_v38  ;;  %v90_v45 = vld [vmem:[#allocation5 + $0xd0] sm:$0xff]  ;;  %v97_v47 = vld [vmem:[#allocation5 + $0x108] sm:$0xff] }
  0x42   :  { %735 = vmatprep.subr.bf16.mxu1 %v734_v31  ;;  %v94_v46 = vld [vmem:[#allocation5 + $0xf0] sm:$0xff]  ;;  %v101_v48 = vld [vmem:[#allocation5 + $0x128] sm:$0xff]  ;;  %v99_v49 = vld [vmem:[#allocation5 + $0x118] sm:$0xff]  ;;  %v708_v51 = vpack.c.bf16 %v92_v43, %v88_v42 }
  0x43   :  { %v103_v50 = vld [vmem:[#allocation5 + $0x138] sm:$0xff]  ;;  %v740_v52 = vpack.c.bf16 %v94_v46, %v90_v45  ;;  %v710_v53 = vpack.c.bf16 %v101_v48, %v97_v47  ;;  %v96_v54 = vld [vmem:[#allocation5 + $0x100] sm:$0xff]  ;;  %v98_v56 = vld [vmem:[#allocation5 + $0x110] sm:$0xff] }
  0x44   :  { %705 = vmatpush1.bf16.msra.mxu0 %v704_v35  ;;  %v100_v55 = vld [vmem:[#allocation5 + $0x120] sm:$0xff]  ;;  %v742_v57 = vpack.c.bf16 %v103_v50, %v99_v49  ;;  %v102_v58 = vld [vmem:[#allocation5 + $0x130] sm:$0xff]  ;;  %v105_v59 = vld [vmem:[#allocation5 + $0x148] sm:$0xff] }
  0x45   :  { %737 = vmatpush1.bf16.msra.mxu1 %v736_v39  ;;  %707 = vmatprep.subr.bf16.mxu0 %v706_v40  ;;  %v109_v60 = vld [vmem:[#allocation5 + $0x168] sm:$0xff]  ;;  %v107_v61 = vld [vmem:[#allocation5 + $0x158] sm:$0xff]  ;;  %v712_v63 = vpack.c.bf16 %v100_v55, %v96_v54  ;;  %v744_v1 = vpack.c.bf16 %v102_v58, %v98_v56  ;;  %v104_v3 = vld [vmem:[#allocation5 + $0x140] sm:$0xff] }
  0x46   :  { %739 = vmatprep.subr.bf16.mxu1 %v738_v44  ;;  %v111_v62 = vld [vmem:[#allocation5 + $0x178] sm:$0xff]  ;;  %v714_v2 = vpack.c.bf16 %v109_v60, %v105_v59  ;;  %v108_v4 = vld [vmem:[#allocation5 + $0x160] sm:$0xff]  ;;  %v106_v5 = vld [vmem:[#allocation5 + $0x150] sm:$0xff] }
  0x47   :  { %v746_v6 = vpack.c.bf16 %v111_v62, %v107_v61  ;;  %v110_v7 = vld [vmem:[#allocation5 + $0x170] sm:$0xff]  ;;  %v113_v8 = vld [vmem:[#allocation5 + $0x188] sm:$0xff]  ;;  %v115_v10 = vld [vmem:[#allocation5 + $0x198] sm:$0xff]  ;;  %v716_v12 = vpack.c.bf16 %v108_v4, %v104_v3 }
  0x48   :  { %709 = vmatpush1.bf16.msra.mxu0 %v708_v51  ;;  %v117_v9 = vld [vmem:[#allocation5 + $0x1a8] sm:$0xff]  ;;  %v119_v11 = vld [vmem:[#allocation5 + $0x1b8] sm:$0xff]  ;;  %v748_v13 = vpack.c.bf16 %v110_v7, %v106_v5  ;;  %v112_v15 = vld [vmem:[#allocation5 + $0x180] sm:$0xff] }
  0x49   :  { %741 = vmatpush1.bf16.msra.mxu1 %v740_v52  ;;  %711 = vmatprep.subr.bf16.mxu0 %v710_v53  ;;  %v718_v14 = vpack.c.bf16 %v117_v9, %v113_v8  ;;  %v116_v16 = vld [vmem:[#allocation5 + $0x1a0] sm:$0xff]  ;;  %v114_v17 = vld [vmem:[#allocation5 + $0x190] sm:$0xff]  ;;  %v750_v18 = vpack.c.bf16 %v119_v11, %v115_v10  ;;  %v121_v20 = vld [vmem:[#allocation5 + $0x1c8] sm:$0xff] }
  0x4a   :  { %743 = vmatprep.subr.bf16.mxu1 %v742_v57  ;;  %v118_v19 = vld [vmem:[#allocation5 + $0x1b0] sm:$0xff]  ;;  %v125_v21 = vld [vmem:[#allocation5 + $0x1e8] sm:$0xff]  ;;  %v123_v22 = vld [vmem:[#allocation5 + $0x1d8] sm:$0xff]  ;;  %v720_v24 = vpack.c.bf16 %v116_v16, %v112_v15 }
  0x4b   :  { %v127_v23 = vld [vmem:[#allocation5 + $0x1f8] sm:$0xff]  ;;  %v752_v25 = vpack.c.bf16 %v118_v19, %v114_v17  ;;  %v722_v26 = vpack.c.bf16 %v125_v21, %v121_v20  ;;  %v120_v27 = vld [vmem:[#allocation5 + $0x1c0] sm:$0xff]  ;;  %v122_v29 = vld [vmem:[#allocation5 + $0x1d0] sm:$0xff] }
  0x4c   :  { %713 = vmatpush1.bf16.msra.mxu0 %v712_v63  ;;  %v124_v28 = vld [vmem:[#allocation5 + $0x1e0] sm:$0xff]  ;;  %v754_v30 = vpack.c.bf16 %v127_v23, %v123_v22  ;;  %v126_v31 = vld [vmem:[#allocation5 + $0x1f0] sm:$0xff]  ;;  %v393_v33 = vld [vmem:[#allocation7 + $0x88] sm:$0xff] }
  0x4d   :  { %745 = vmatpush1.bf16.msra.mxu1 %v744_v1  ;;  %715 = vmatprep.subr.bf16.mxu0 %v714_v2  ;;  %v392_v32 = vld [vmem:[#allocation7 + $0x80] sm:$0xff]  ;;  %v425_v35 = vld [vmem:[#allocation7 + $0x188] sm:$0xff]  ;;  %v724_v36 = vpack.c.bf16 %v124_v28, %v120_v27  ;;  %v756_v37 = vpack.c.bf16 %v126_v31, %v122_v29  ;;  %v62_v44 = vld [vmem:[#allocation2] sm:$0xff] }
  0x4e   :  { %747 = vmatprep.subr.bf16.mxu1 %v746_v6  ;;  %v424_v34 = vld [vmem:[#allocation7 + $0x180] sm:$0xff]  ;;  %v758_v38 = vpack.c.bf16 %v393_v33, %v392_v32  ;;  %v377_v41 = vld [vmem:[#allocation7 + $0x8] sm:$0xff]  ;;  %v63_v47 = vld [vmem:[#allocation2 + $0x8] sm:$0xff] }
  0x4f   :  { %v790_v39 = vpack.c.bf16 %v425_v35, %v424_v34  ;;  %v376_v40 = vld [vmem:[#allocation7] sm:$0xff]  ;;  %v409_v43 = vld [vmem:[#allocation7 + $0x108] sm:$0xff]  ;;  %v394_v48 = vld [vmem:[#allocation7 + $0x90] sm:$0xff] }
  0x50   :  { %717 = vmatpush1.bf16.msra.mxu0 %v716_v12  ;;  %v408_v42 = vld [vmem:[#allocation7 + $0x100] sm:$0xff]  ;;  %v760_v45 = vpack.c.bf16 %v377_v41, %v376_v40  ;;  %v395_v49 = vld [vmem:[#allocation7 + $0x98] sm:$0xff]  ;;  %v426_v50 = vld [vmem:[#allocation7 + $0x190] sm:$0xff] }
  0x51   :  { %749 = vmatpush1.bf16.msra.mxu1 %v748_v13  ;;  %719 = vmatprep.subr.bf16.mxu0 %v718_v14  ;;  %v792_v46 = vpack.c.bf16 %v409_v43, %v408_v42  ;;  %v762_v51 = vpack.c.bf16 %v395_v49, %v394_v48  ;;  %v427_v52 = vld [vmem:[#allocation7 + $0x198] sm:$0xff]  ;;  %v378_v53 = vld [vmem:[#allocation7 + $0x10] sm:$0xff]  ;;  %v397_v60 = vld [vmem:[#allocation7 + $0xa8] sm:$0xff] }
  0x52   :  { %751 = vmatprep.subr.bf16.mxu1 %v750_v18  ;;  %v379_v54 = vld [vmem:[#allocation7 + $0x18] sm:$0xff]  ;;  %v794_v55 = vpack.c.bf16 %v427_v52, %v426_v50  ;;  %v410_v57 = vld [vmem:[#allocation7 + $0x110] sm:$0xff]  ;;  %v428_v61 = vld [vmem:[#allocation7 + $0x1a0] sm:$0xff] }
  0x53   :  { %v764_v56 = vpack.c.bf16 %v379_v54, %v378_v53  ;;  %v411_v58 = vld [vmem:[#allocation7 + $0x118] sm:$0xff]  ;;  %v429_v63 = vld [vmem:[#allocation7 + $0x1a8] sm:$0xff]  ;;  %v380_v1 = vld [vmem:[#allocation7 + $0x20] sm:$0xff] }
  0x54   :  { %721 = vmatpush1.bf16.msra.mxu0 %v720_v24  ;;  %v796_v59 = vpack.c.bf16 %v411_v58, %v410_v57  ;;  %v381_v2 = vld [vmem:[#allocation7 + $0x28] sm:$0xff]  ;;  %v798_v3 = vpack.c.bf16 %v429_v63, %v428_v61  ;;  %v412_v5 = vld [vmem:[#allocation7 + $0x120] sm:$0xff]  ;;  %v398_v8 = vld [vmem:[#allocation7 + $0xb0] sm:$0xff] }
  0x55   :  { %753 = vmatpush1.bf16.msra.mxu1 %v752_v25  ;;  %723 = vmatprep.subr.bf16.mxu0 %v722_v26  ;;  %v768_v4 = vpack.c.bf16 %v381_v2, %v380_v1  ;;  %v413_v6 = vld [vmem:[#allocation7 + $0x128] sm:$0xff]  ;;  %v399_v9 = vld [vmem:[#allocation7 + $0xb8] sm:$0xff]  ;;  %v430_v10 = vld [vmem:[#allocation7 + $0x1b0] sm:$0xff] }
  0x56   :  { %755 = vmatprep.subr.bf16.mxu1 %v754_v30  ;;  %v800_v7 = vpack.c.bf16 %v413_v6, %v412_v5  ;;  %v770_v11 = vpack.c.bf16 %v399_v9, %v398_v8  ;;  %v431_v12 = vld [vmem:[#allocation7 + $0x1b8] sm:$0xff]  ;;  %v382_v13 = vld [vmem:[#allocation7 + $0x30] sm:$0xff]  ;;  %v400_v20 = vld [vmem:[#allocation7 + $0xc0] sm:$0xff] }
  0x57   :  { %v383_v14 = vld [vmem:[#allocation7 + $0x38] sm:$0xff]  ;;  %v802_v15 = vpack.c.bf16 %v431_v12, %v430_v10  ;;  %v414_v17 = vld [vmem:[#allocation7 + $0x130] sm:$0xff]  ;;  %v401_v21 = vld [vmem:[#allocation7 + $0xc8] sm:$0xff] }
  0x58   :  { %725 = vmatpush1.bf16.msra.mxu0 %v724_v36  ;;  %v772_v16 = vpack.c.bf16 %v383_v14, %v382_v13  ;;  %v415_v18 = vld [vmem:[#allocation7 + $0x138] sm:$0xff]  ;;  %v432_v22 = vld [vmem:[#allocation7 + $0x1c0] sm:$0xff]  ;;  %v774_v23 = vpack.c.bf16 %v401_v21, %v400_v20  ;;  %v433_v24 = vld [vmem:[#allocation7 + $0x1c8] sm:$0xff] }
  0x59   :  { %757 = vmatpush1.bf16.msra.mxu1 %v756_v37  ;;  %759 = vmatprep.subr.bf16.mxu0 %v758_v38  ;;  %v804_v19 = vpack.c.bf16 %v415_v18, %v414_v17  ;;  %v384_v25 = vld [vmem:[#allocation7 + $0x40] sm:$0xff]  ;;  %v385_v26 = vld [vmem:[#allocation7 + $0x48] sm:$0xff]  ;;  %v806_v27 = vpack.c.bf16 %v433_v24, %v432_v22  ;;  %v402_v31 = vld [vmem:[#allocation7 + $0xd0] sm:$0xff] }
  0x5a   :  { %791 = vmatprep.subr.bf16.mxu1 %v790_v39  ;;  %v776_v28 = vpack.c.bf16 %v385_v26, %v384_v25  ;;  %v416_v29 = vld [vmem:[#allocation7 + $0x140] sm:$0xff]  ;;  %v417_v30 = vld [vmem:[#allocation7 + $0x148] sm:$0xff]  ;;  %v403_v33 = vld [vmem:[#allocation7 + $0xd8] sm:$0xff] }
  0x5b   :  { %215 = vmatmul.mubr.f32.vlgmr.msra.gmra.mrb[0].mxu0 %v62_v44  ;;  %v808_v32 = vpack.c.bf16 %v417_v30, %v416_v29  ;;  %v434_v34 = vld [vmem:[#allocation7 + $0x1d0] sm:$0xff]  ;;  %v435_v35 = vld [vmem:[#allocation7 + $0x1d8] sm:$0xff]  ;;  %v778_v36 = vpack.c.bf16 %v403_v33, %v402_v31  ;;  %v404_v43 = vld [vmem:[#allocation7 + $0xe0] sm:$0xff] }
  0x5c   :  { %292 = vmatmul.mubr.f32.vlgmr.msra.gmra.mrb[0].mxu1 %v62_v44  ;;  %220 = vmatprep.mubr.f32.mxu0 %v948_v0  ;;  %v810_v37 = vpack.c.bf16 %v435_v35, %v434_v34  ;;  %v386_v38 = vld [vmem:[#allocation7 + $0x50] sm:$0xff]  ;;  %v387_v39 = vld [vmem:[#allocation7 + $0x58] sm:$0xff]  ;;  %v405_v44 = vld [vmem:[#allocation7 + $0xe8] sm:$0xff] }
  0x5d   :  { %297 = vmatprep.mubr.f32.mxu1 %v948_v0  ;;  %761 = vmatpush3.bf16.msra.mxu0 %v760_v45  ;;  %v396_v0 = vld [vmem:[#allocation7 + $0xa0] sm:$0xff]  ;;  %v418_v40 = vld [vmem:[#allocation7 + $0x150] sm:$0xff]  ;;  %v780_v41 = vpack.c.bf16 %v387_v39, %v386_v38  ;;  %v419_v42 = vld [vmem:[#allocation7 + $0x158] sm:$0xff] }
  0x5e   :  { %793 = vmatpush3.bf16.msra.mxu1 %v792_v46  ;;  %763 = vmatprep.subr.bf16.mxu0 %v762_v51  ;;  %v766_v62 = vpack.c.bf16 %v397_v60, %v396_v0  ;;  %v812_v45 = vpack.c.bf16 %v419_v42, %v418_v40  ;;  %v782_v46 = vpack.c.bf16 %v405_v44, %v404_v43  ;;  %v437_v48 = vld [vmem:[#allocation7 + $0x1e8] sm:$0xff]  ;;  %v388_v49 = vld [vmem:[#allocation7 + $0x60] sm:$0xff]  ;;  %v438_v57 = vld [vmem:[#allocation7 + $0x1f0] sm:$0xff] }
  0x5f   :  { %221 = vmatmul.mubr.f32.gmra.mrb[2].mxu0 %v63_v47  ;;  %795 = vmatprep.subr.bf16.mxu1 %v794_v55  ;;  %v389_v51 = vld [vmem:[#allocation7 + $0x68] sm:$0xff]  ;;  %v420_v52 = vld [vmem:[#allocation7 + $0x160] sm:$0xff]  ;;  %v406_v55 = vld [vmem:[#allocation7 + $0xf0] sm:$0xff] }
  0x60   :  { %298 = vmatmul.mubr.f32.gmra.mrb[2].mxu1 %v63_v47  ;;  %v436_v47 = vld [vmem:[#allocation7 + $0x1e0] sm:$0xff]  ;;  %v421_v53 = vld [vmem:[#allocation7 + $0x168] sm:$0xff]  ;;  %v784_v54 = vpack.c.bf16 %v389_v51, %v388_v49  ;;  %v439_v0 = vld [vmem:[#allocation7 + $0x1f8] sm:$0xff] }
  0x61   :  { %765 = vmatpush3.bf16.msra.mxu0 %v764_v56  ;;  %v814_v50 = vpack.c.bf16 %v437_v48, %v436_v47  ;;  %v407_v56 = vld [vmem:[#allocation7 + $0xf8] sm:$0xff]  ;;  %v816_v58 = vpack.c.bf16 %v421_v53, %v420_v52  ;;  %v390_v60 = vld [vmem:[#allocation7 + $0x70] sm:$0xff] }
  0x62   :  { %797 = vmatpush3.bf16.msra.mxu1 %v796_v59  ;;  %767 = vmatprep.subr.bf16.mxu0 %v766_v62  ;;  %v786_v59 = vpack.c.bf16 %v407_v56, %v406_v55  ;;  %v391_v61 = vld [vmem:[#allocation7 + $0x78] sm:$0xff]  ;;  %v818_v62 = vpack.c.bf16 %v439_v0, %v438_v57  ;;  %v422_v63 = vld [vmem:[#allocation7 + $0x170] sm:$0xff] }
  0x63   :  { %799 = vmatprep.subr.bf16.mxu1 %v798_v3  ;;  %v423_v1 = vld [vmem:[#allocation7 + $0x178] sm:$0xff]  ;;  %v788_v2 = vpack.c.bf16 %v391_v61, %v390_v60 }
  0x64   :  { %v820_v3 = vpack.c.bf16 %v423_v1, %v422_v63 }
  0x65   :  { %769 = vmatpush3.bf16.msra.mxu0 %v768_v4  ;;  %v130_v4 = vlaneseq }
  0x66   :  { %801 = vmatpush3.bf16.msra.mxu1 %v800_v7  ;;  %771 = vmatprep.subr.bf16.mxu0 %v770_v11  ;;  %v128_v7 = vld [vmem:[%s1084_s2] sm:$0xf] }
  0x67   :  { %803 = vmatprep.subr.bf16.mxu1 %v802_v15  ;;  %v131_v5 = vshrl.u32 %v130_v4, 7 }
  0x69   :  { %773 = vmatpush3.bf16.msra.mxu0 %v772_v16  ;;  %v132_v6 = vsub.s32 0, %v131_v5  ;;  %v140_v8 = vsub.s32 2, %v131_v5  ;;  %v136_v9 = vsub.s32 1, %v131_v5  ;;  %v144_v10 = vsub.s32 3, %v131_v5 }
  0x6a   :  { %805 = vmatpush3.bf16.msra.mxu1 %v804_v19  ;;  %775 = vmatprep.subr.bf16.mxu0 %v774_v23 }
  0x6b   :  { %807 = vmatprep.subr.bf16.mxu1 %v806_v27  ;;  %v133_v11 = vrot.slane %v128_v7, %v132_v6  ;;  %v141_v12 = vrot.slane %v128_v7, %v140_v8  ;;  %v137_v13 = vrot.slane %v128_v7, %v136_v9  ;;  %v145_v14 = vrot.slane %v128_v7, %v144_v10 }
  0x6d   :  { %777 = vmatpush3.bf16.msra.mxu0 %v776_v28 }
  0x6e   :  { %809 = vmatpush3.bf16.msra.mxu1 %v808_v32  ;;  %779 = vmatprep.subr.bf16.mxu0 %v778_v36 }
  0x6f   :  { %811 = vmatprep.subr.bf16.mxu1 %v810_v37 }
  0x71   :  { %781 = vmatpush3.bf16.msra.mxu0 %v780_v41 }
  0x72   :  { %813 = vmatpush3.bf16.msra.mxu1 %v812_v45  ;;  %783 = vmatprep.subr.bf16.mxu0 %v782_v46 }
  0x73   :  { %815 = vmatprep.subr.bf16.mxu1 %v814_v50 }
  0x75   :  { %785 = vmatpush3.bf16.msra.mxu0 %v784_v54 }
  0x76   :  { %817 = vmatpush3.bf16.msra.mxu1 %v816_v58  ;;  %787 = vmatprep.subr.bf16.mxu0 %v786_v59 }
  0x77   :  { %819 = vmatprep.subr.bf16.mxu1 %v818_v62 }
  0x79   :  { %789 = vmatpush3.bf16.msra.mxu0 %v788_v2 }
  0x7a   :  { %821 = vmatpush3.bf16.msra.mxu1 %v820_v3 }
 0x12e   :  { %v216_v15 = vpop.f32.mrb[0].mxu0 }
 0x12f   :  { %v1029_v16 = vadd.f32 %v216_v15, %v133_v11  ;;  %v293_v17 = vpop.f32.mrb[0].mxu1  ;;  %v218_v18 = vpop.f32.mrb[1].mxu0 }
 0x130   :  { %v1031_v19 = vadd.f32 %v293_v17, %v141_v12  ;;  %v219_v20 = vadd.f32 %v218_v18, %v137_v13  ;;  %v295_v21 = vpop.f32.mrb[1].mxu1 }
 0x131   :  { %v312_v22 = vmul.f32 0.044715, %v1029_v16  ;;  %v1034_v23 = vadd.f32 %v295_v21, %v145_v14 }
 0x132   :  { %v314_v24 = vmul.f32 0.044715, %v1031_v19  ;;  %v313_v25 = vmul.f32 0.044715, %v219_v20  ;;  %v222_v26 = vpop.f32.mrb[2].mxu0 }
 0x133   :  { %v320_v27 = vmul.f32 %v312_v22, %v1029_v16  ;;  %v315_v28 = vmul.f32 0.044715, %v1034_v23  ;;  %v1039_v29 = vadd.f32 %v222_v26, %v133_v11  ;;  %v299_v30 = vpop.f32.mrb[2].mxu1  ;;  %v224_v31 = vpop.f32.mrb[3].mxu0  ;;  %v305_v11 = vmul.f32 0.5, %v219_v20 }
 0x134   :  { %v322_v32 = vmul.f32 %v314_v24, %v1031_v19  ;;  %v321_v33 = vmul.f32 %v313_v25, %v219_v20  ;;  %v1042_v34 = vadd.f32 %v299_v30, %v141_v12  ;;  %v225_v35 = vadd.f32 %v224_v31, %v137_v13  ;;  %v301_v36 = vpop.f32.mrb[3].mxu1 }
 0x135   :  { %v328_v37 = vmul.f32 %v320_v27, %v1029_v16  ;;  %v323_v38 = vmul.f32 %v315_v28, %v1034_v23  ;;  %v316_v39 = vmul.f32 0.044715, %v1039_v29  ;;  %v302_v40 = vadd.f32 %v301_v36, %v145_v14 }
 0x136   :  { %v330_v41 = vmul.f32 %v322_v32, %v1031_v19  ;;  %v318_v42 = vmul.f32 0.044715, %v1042_v34  ;;  %v317_v43 = vmul.f32 0.044715, %v225_v35  ;;  %v329_v44 = vmul.f32 %v321_v33, %v219_v20 }
 0x137   :  { %v336_v45 = vadd.f32 %v328_v37, %v1029_v16  ;;  %v319_v46 = vmul.f32 0.044715, %v302_v40  ;;  %v324_v48 = vmul.f32 %v316_v39, %v1039_v29  ;;  %v331_v54 = vmul.f32 %v323_v38, %v1034_v23 }
 0x138   :  { %v338_v47 = vadd.f32 %v330_v41, %v1031_v19  ;;  %v325_v49 = vmul.f32 %v317_v43, %v225_v35  ;;  %v337_v50 = vadd.f32 %v329_v44, %v219_v20  ;;  %v326_v52 = vmul.f32 %v318_v42, %v1042_v34  ;;  %v617_v42 = vld [vmem:[%s1086_s4] ss:$0 sm:$0xff]  ;;  %s913_s4 = scalar_lea.vmem %s605_s9, 256 }
 0x139   :  { %v344_v51 = vmul.f32 0.7978846, %v336_v45  ;;  %v327_v53 = vmul.f32 %v319_v46, %v302_v40  ;;  %v339_v58 = vadd.f32 %v331_v54, %v1034_v23  ;;  %v332_v60 = vmul.f32 %v324_v48, %v1039_v29  ;;  %p914_p10 = scmp.ne.s32.totalorder %s605_s9, %s913_s4  ;;  %p919_p12 = scmp.lt.s32.totalorder %s913_s4, %s913_s4 }
 0x13a   :  { %v346_v55 = vmul.f32 0.7978846, %v338_v47  ;;  %v345_v56 = vmul.f32 0.7978846, %v337_v50  ;;  %v333_v57 = vmul.f32 %v325_v49, %v225_v35  ;;  %v334_v63 = vmul.f32 %v326_v52, %v1042_v34 }
 0x13b   :  { %831 = vtanh.f32 %v344_v51  ;;  %v335_v59 = vmul.f32 %v327_v53, %v302_v40  ;;  %v347_v61 = vmul.f32 0.7978846, %v339_v58  ;;  %v340_v2 = vadd.f32 %v332_v60, %v1039_v29  ;;  %p920_p13 = por %p919_p12, %p918_p11 }
 0x13c   :  { %833 = vtanh.f32 %v346_v55  ;;  %v341_v0 = vadd.f32 %v333_v57, %v225_v35  ;;  %v342_v4 = vadd.f32 %v334_v63, %v1042_v34  ;;  %v304_v14 = vmul.f32 0.5, %v1029_v16 }
 0x13d   :  { %835 = vtanh.f32 %v345_v56  ;;  %v343_v62 = vadd.f32 %v335_v59, %v302_v40  ;;  %v348_v5 = vmul.f32 0.7978846, %v340_v2  ;;  %v307_v21 = vmul.f32 0.5, %v1034_v23  ;;  %p921_p0 = pnand %p920_p13, %p914_p10 }
 0x13e   :  { %v349_v1 = vmul.f32 0.7978846, %v341_v0  ;;  %837 = vtanh.f32 %v347_v61  ;;  %v350_v6 = vmul.f32 0.7978846, %v342_v4  ;;  %v306_v25 = vmul.f32 0.5, %v1031_v19 }
 0x13f   :  { %v351_v3 = vmul.f32 0.7978846, %v343_v62  ;;  %v309_v27 = vmul.f32 0.5, %v225_v35  ;;  %v311_v20 = vmul.f32 0.5, %v302_v40  ;;  %v308_v37 = vmul.f32 0.5, %v1039_v29 }
 0x140   :  { %839 = vtanh.f32 %v349_v1  ;;  %v310_v35 = vmul.f32 0.5, %v1042_v34 }
 0x141   :  { %841 = vtanh.f32 %v351_v3 }
 0x142   :  { %843 = vtanh.f32 %v348_v5 }
 0x143   :  { %845 = vtanh.f32 %v350_v6 }
 0x145   :  { %v832_v7 = vpop.eup %831 }
 0x146   :  { %v834_v8 = vpop.eup %833  ;;  %v360_v10 = vadd.f32 1.0, %v832_v7 }
 0x147   :  { %v836_v9 = vpop.eup %835  ;;  %v362_v15 = vadd.f32 1.0, %v834_v8 }
 0x148   :  { %v361_v12 = vadd.f32 1.0, %v836_v9  ;;  %v838_v13 = vpop.eup %837  ;;  %v368_v26 = vmul.f32 %v360_v10, %v304_v14 }
 0x149   :  { %v363_v22 = vadd.f32 1.0, %v838_v13  ;;  %v370_v16 = vmul.f32 %v362_v15, %v306_v25 }
 0x14a   :  { %v840_v17 = vpop.eup %839  ;;  %v369_v18 = vmul.f32 %v361_v12, %v305_v11 }
 0x14b   :  { %v842_v24 = vpop.eup %841  ;;  %v365_v28 = vadd.f32 1.0, %v840_v17  ;;  %v371_v31 = vmul.f32 %v363_v22, %v307_v21 }
 0x14c   :  { %v844_v30 = vpop.eup %843  ;;  %511 = vmatprep.mubr.f32.mxu0 %v369_v18  ;;  %v367_v32 = vadd.f32 1.0, %v842_v24 }
 0x14d   :  { %v846_v33 = vpop.eup %845  ;;  %512 = vmatmul.mubr.f32.vlgmr.msra.gmra.mrb[4].mxu0 %v368_v26  ;;  %v373_v36 = vmul.f32 %v365_v28, %v309_v27  ;;  %v364_v38 = vadd.f32 1.0, %v844_v30  ;;  %586 = vmatprep.mubr.f32.mxu1 %v371_v31 }
 0x14e   :  { %v375_v23 = vmul.f32 %v367_v32, %v311_v20  ;;  %v366_v39 = vadd.f32 1.0, %v846_v33  ;;  %587 = vmatmul.mubr.f32.vlgmr.msra.gmra.mrb[4].mxu1 %v370_v16 }
 0x14f   :  { %516 = vmatprep.mubr.f32.mxu0 %v373_v36  ;;  %v372_v19 = vmul.f32 %v364_v38, %v308_v37 }
 0x150   :  { %591 = vmatprep.mubr.f32.mxu1 %v375_v23  ;;  %v374_v41 = vmul.f32 %v366_v39, %v310_v35 }
 0x151   :  { %517 = vmatmul.mubr.f32.gmra.mrb[6].mxu0 %v372_v19 }
 0x152   :  { %592 = vmatmul.mubr.f32.gmra.mrb[6].mxu1 %v374_v41 }
 0x220   :  { %v650_v40 = vpop.f32.mrb[4].mxu0 }
 0x221   :  { %v651_v43 = vpop.f32.mrb[5].mxu0  ;;  %v688_v29 = vpop.f32.mrb[4].mxu1 }
 0x222   :  { %v652_v44 = vadd.f32 %v651_v43, %v650_v40  ;;  %v689_v45 = vpop.f32.mrb[5].mxu1 }
 0x223   :  { %v690_v47 = vadd.f32 %v689_v45, %v688_v29 }
 0x224   :  { %v514_v46 = vadd.f32 %v652_v44, %v617_v42  ;;  %v653_v48 = vpop.f32.mrb[6].mxu0 }
 0x225   :  { %v654_v49 = vpop.f32.mrb[7].mxu0  ;;  %v691_v51 = vpop.f32.mrb[6].mxu1 }
 0x226   :  { %v589_v50 = vadd.f32 %v690_v47, %v514_v46  ;;  %v655_v34 = vadd.f32 %v654_v49, %v653_v48  ;;  %v692_v52 = vpop.f32.mrb[7].mxu1 }
 0x227   :  { %v693_v54 = vadd.f32 %v692_v52, %v691_v51 }
 0x228   :  { %597 = vst [vmem:[#allocation8] sm:$0xff] %v589_v50  ;;  %v519_v53 = vadd.f32 %v655_v34, %v617_v42 }
 0x22a   :  { %v594_v55 = vadd.f32 %v693_v54, %v519_v53 }
 0x22c   :  { %598 = vst [vmem:[#allocation8 + $0x8] sm:$0xff] %v594_v55 }
 0x22d   :  { %924 = shalt.err (!%p921_p0)
}
 0x22e   :  { %s925_s12 = scalar_lea.hbm %s1087_s5, 256 }
 0x22f   :  { %p926_p1 = scmp.ne.s32.totalorder %s1087_s5, %s925_s12  ;;  %p929_p2 = scmp.lt.u32.totalorder %s925_s12, %s1087_s5 }
 0x231   :  { %p931_p3 = pnand %p929_p2, %p926_p1 }
 0x233   :  { %934 = shalt.err (!%p931_p3)
}
 0x234   :  { %610 = dma.vmem_to_hbm [thread:$0]  %s605_s9, 256, %s1087_s5, [#allocation4], %s945_s1, %s945_s1, %s946_s17  }
 0x235   :  { %939 = dma.done.wait [#allocation4], 256  }
 0x236   :  { %940 = vsyncadd [#allocation4], 4294967040 }
 0x237   :  { %614 = vsyncpa [#allocation3], 1 }
 0x238   :  { %615 = vsyncpa [#allocation6], 1 }
 0x239   :  { %616 = vsyncpa [#allocation4], 1 }

</bundles_post_ra>
